<compile_context>
chip_gen: v7x
topology: tpu7x:2x2x1
jax: 0.10.0
libtpu: 0.0.40
codegen_flags: <defaults>
</compile_context>

<pallas_src>
import jax
import jax.numpy as jnp
from jax.experimental import pallas as pl
from jax.experimental.pallas import tpu as pltpu


def _attention_kernel(w_ref, emb_ref, mask_ref, out_ref, wts_ref):
    # w_ref:    (1, D)        attention weight row (lane-dense, resident)
    # emb_ref:  (Bb, S, D)    block of batch rows
    # mask_ref: (Bb, S)       lane-dense mask block (0 => masked out)
    # out_ref:  (Bb, D)       pooled outputs
    # wts_ref:  (Bb, S)       softmax weights (lane-dense)
    bb, _, d = emb_ref.shape
    emb = emb_ref[...]                                      # native dtype
    w = jnp.broadcast_to(w_ref[...], (bb, 1, d))            # (Bb, 1, D)

    # scores[b, s] = <emb[b, s, :], w>  — batched (1,D)@(S,D)^T on the MXU,
    # accumulated in f32, result already lane-dense along S.
    scores = jnp.einsum(
        "bkd,bsd->bks", w, emb, preferred_element_type=jnp.float32
    )[:, 0, :]                                              # (Bb, S) f32

    # masked_fill(mask == 0, -1e9) — exact PyTorch semantics (lane-dense select).
    scores = jnp.where(mask_ref[...] == 0, jnp.float32(-1e9), scores)

    # Softmax over the sequence (lane) axis, numerically stable.
    s_max = jnp.max(scores, axis=-1, keepdims=True)         # (Bb, 1)
    e = jnp.exp(scores - s_max)                             # (Bb, S)
    denom = jnp.sum(e, axis=-1, keepdims=True)              # (Bb, 1)
    weights = e * pl.reciprocal(denom)                      # one recip per row
    wts_ref[...] = weights.astype(wts_ref.dtype)

    # att_output[b, :] = weights[b, :] @ emb[b, :, :]  — batched (1,S)@(S,D) on
    # the MXU with f32 accumulation (no (S,D) f32 temporary, no XLU reduce).
    pooled = jnp.einsum(
        "bks,bsd->bkd",
        weights[:, None, :].astype(emb.dtype),
        emb,
        preferred_element_type=jnp.float32,
    )                                                       # (Bb, 1, D)
    out_ref[...] = pooled[:, 0, :].astype(out_ref.dtype)


def _pick_block_b(B, S, D, itemsize, target_block_bytes=2 << 20):
    """Largest divisor of B whose (Bb, S, D) embeddings tile is <= ~2 MiB."""
    per_row = max(1, S * D * itemsize)
    block_b = max(1, min(B, target_block_bytes // per_row))
    while B % block_b:
        block_b -= 1
    return int(block_b)


def attention_layer(embeddings, weight, mask=None, *, block_b=None):
    """Pallas implementation of AttentionLayer.forward.

    embeddings: (B, S, D)
    weight:     (1, D)  (nn.Linear(D, 1, bias=False).weight, PyTorch layout)
    mask:       optional (B, S); entries == 0 are masked out
    returns (att_output (B, D), att_weights (B, S))
    """
    B, S, D = embeddings.shape
    if mask is None:
        mask = jnp.ones((B, S), dtype=jnp.float32)
    mask2 = mask.astype(jnp.float32)            # lane-dense (B, S) mask
    w_row = weight.reshape(1, D)                # lane-dense weight row

    itemsize = jnp.dtype(embeddings.dtype).itemsize
    if block_b is None:
        block_b = _pick_block_b(B, S, D, itemsize)
    grid = (B // block_b,)

    flops = 4 * B * S * D                       # two matmuls
    bytes_accessed = (
        B * S * D * itemsize                    # embeddings in
        + B * S * 4                             # mask in
        + D * 4                                 # weight in
        + B * D * itemsize                      # att_output out
        + B * S * itemsize                      # att_weights out
    )

    out, wts = pl.pallas_call(
        _attention_kernel,
        out_shape=(
            jax.ShapeDtypeStruct((B, D), embeddings.dtype),
            jax.ShapeDtypeStruct((B, S), embeddings.dtype),
        ),
        grid_spec=pltpu.PrefetchScalarGridSpec(
            num_scalar_prefetch=0,
            grid=grid,
            in_specs=[
                # Constant block index -> weight stays resident, no re-DMA.
                pl.BlockSpec((1, D), lambda b: (0, 0)),
                pl.BlockSpec((block_b, S, D), lambda b: (b, 0, 0)),
                pl.BlockSpec((block_b, S), lambda b: (b, 0)),
            ],
            out_specs=[
                pl.BlockSpec((block_b, D), lambda b: (b, 0)),
                pl.BlockSpec((block_b, S), lambda b: (b, 0)),
            ],
        ),
        compiler_params=pltpu.CompilerParams(
            dimension_semantics=("parallel",)),
        cost_estimate=pl.CostEstimate(
            flops=flops, transcendentals=B * S, bytes_accessed=bytes_accessed),
    )(w_row, embeddings, mask2)

    return out, wts


def _reference(embeddings, weight, mask=None):
    # Pure-JAX reference mirroring the PyTorch forward exactly.
    scores = jnp.einsum("bsd,d->bs", embeddings, weight.reshape(-1))
    if mask is not None:
        scores = jnp.where(mask == 0, -1e9, scores)
    wts = jax.nn.softmax(scores, axis=-1)
    out = jnp.sum(embeddings * wts[..., None], axis=1)
    return out, wts


if __name__ == "__main__":
    B, S, D = 2, 8, 32

    key = jax.random.PRNGKey(0)
    k_emb, k_w = jax.random.split(key)

    embeddings = jax.random.normal(k_emb, (B, S, D), dtype=jnp.float32)
    # Deterministic Linear(D, 1, bias=False) weight, PyTorch layout (1, D).
    weight = jax.random.normal(k_w, (1, D), dtype=jnp.float32) * 0.1
    # Mask: first batch row masks out the last 3 positions, second row full.
    mask = jnp.ones((B, S), dtype=jnp.float32)
    mask = mask.at[0, S - 3:].set(0.0)

    out, wts = attention_layer(embeddings, weight, mask)
    jax.block_until_ready((out, wts))

    ref_out, ref_wts = _reference(embeddings, weight, mask)
    # f32 MXU accumulation; 1e-4 tolerance leaves margin for matmul pass precision.
    assert jnp.allclose(out, ref_out, atol=1e-4, rtol=1e-4)
    assert jnp.allclose(wts, ref_wts, atol=1e-4, rtol=1e-4)

    print("KERNEL_OK")
</pallas_src>

<mosaic_0001>
module attributes {stable_mosaic.version = 11 : i64} {
  func.func @_attention_kernel(%arg0: i32, %arg1: memref<1x32xf32, #tpu.memory_space<vmem>>, %arg2: memref<2x8x32xf32, #tpu.memory_space<vmem>>, %arg3: memref<2x8xf32, #tpu.memory_space<vmem>>, %arg4: memref<2x32xf32, #tpu.memory_space<vmem>>, %arg5: memref<2x8xf32, #tpu.memory_space<vmem>>) attributes {dimension_semantics = [#tpu.dimension_semantics<parallel>], iteration_bounds = array<i64: 1>, scalar_prefetch = 0 : i64, scratch_operands = 0 : i64, tpu.core_type = #tpu.core_type<tc>, window_params = [{pipeline_mode = #tpu.pipeline_mode<synchronous>, transform_indices = @transform_0, window_bounds = array<i64: 1, 32>}, {transform_indices = @transform_1, window_bounds = array<i64: 2, 8, 32>}, {transform_indices = @transform_2, window_bounds = array<i64: 2, 8>}, {transform_indices = @transform_3, window_bounds = array<i64: 2, 32>}, {transform_indices = @transform_4, window_bounds = array<i64: 2, 8>}]} {
    %c0 = arith.constant 0 : index
    %c0_0 = arith.constant 0 : index
    %c0_1 = arith.constant 0 : index
    %0 = vector.load %arg2[%c0, %c0_0, %c0_1] : memref<2x8x32xf32, #tpu.memory_space<vmem>>, vector<2x8x32xf32>
    %c0_2 = arith.constant 0 : index
    %c0_3 = arith.constant 0 : index
    %1 = vector.load %arg1[%c0_2, %c0_3] : memref<1x32xf32, #tpu.memory_space<vmem>>, vector<1x32xf32>
    %2 = vector.shape_cast %1 : vector<1x32xf32> to vector<1x1x32xf32>
    %3 = vector.broadcast %2 : vector<1x1x32xf32> to vector<2x1x32xf32>
    "tpu.trace_start"() <{level = 10 : i32, message = "bkd,bsd->bks"}> : () -> ()
    %cst = arith.constant dense<0.000000e+00> : vector<2x1x8xf32>
    %4 = tpu.matmul %3, %0, %cst {dimension_numbers = #tpu.dot_dimension_numbers<[2], [2], [1], [1], [0, 0, 0, 1, 1, 1], [0], [0]>} : vector<2x1x32xf32>, vector<2x8x32xf32>, vector<2x1x8xf32> -> vector<2x1x8xf32>
    "tpu.trace_stop"() : () -> ()
    %5 = vector.shape_cast %4 : vector<2x1x8xf32> to vector<2x8xf32>
    %c0_4 = arith.constant 0 : index
    %c0_5 = arith.constant 0 : index
    %6 = vector.load %arg3[%c0_4, %c0_5] : memref<2x8xf32, #tpu.memory_space<vmem>>, vector<2x8xf32>
    %cst_6 = arith.constant 0.000000e+00 : f32
    %7 = vector.broadcast %cst_6 : f32 to vector<2x8xf32>
    %8 = arith.cmpf oeq, %6, %7 : vector<2x8xf32>
    %cst_7 = arith.constant -1.000000e+09 : f32
    %9 = vector.broadcast %cst_7 : f32 to vector<2x8xf32>
    %10 = arith.select %8, %9, %5 : vector<2x8xi1>, vector<2x8xf32>
    %cst_8 = arith.constant dense<0xFF800000> : vector<2xf32>
    %11 = vector.multi_reduction <maximumf>, %10, %cst_8 [1] : vector<2x8xf32> to vector<2xf32>
    %12 = vector.shape_cast %11 : vector<2xf32> to vector<2x1xf32>
    %13 = vector.broadcast %12 : vector<2x1xf32> to vector<2x8xf32>
    %14 = arith.subf %10, %13 : vector<2x8xf32>
    %15 = math.exp %14 : vector<2x8xf32>
    %cst_9 = arith.constant dense<0.000000e+00> : vector<2xf32>
    %16 = vector.multi_reduction <add>, %15, %cst_9 [1] : vector<2x8xf32> to vector<2xf32>
    %17 = vector.shape_cast %16 : vector<2xf32> to vector<2x1xf32>
    %18 = tpu.reciprocal %17 : vector<2x1xf32> -> vector<2x1xf32>
    %19 = vector.broadcast %18 : vector<2x1xf32> to vector<2x8xf32>
    %20 = arith.mulf %15, %19 : vector<2x8xf32>
    %c0_10 = arith.constant 0 : index
    %c0_11 = arith.constant 0 : index
    %21 = vector.load %arg5[%c0_10, %c0_11] : memref<2x8xf32, #tpu.memory_space<vmem>>, vector<2x8xf32>
    tpu.vector_store %arg5[%c0_10, %c0_11], %20 {strides = array<i32>} : memref<2x8xf32, #tpu.memory_space<vmem>>, vector<2x8xf32>,
    %22 = vector.shape_cast %20 : vector<2x8xf32> to vector<2x1x8xf32>
    "tpu.trace_start"() <{level = 10 : i32, message = "bks,bsd->bkd"}> : () -> ()
    %cst_12 = arith.constant dense<0.000000e+00> : vector<2x1x32xf32>
    %23 = tpu.matmul %22, %0, %cst_12 {dimension_numbers = #tpu.dot_dimension_numbers<[2], [1], [1], [2], [0, 0, 0, 1, 1, 2], [0], [0]>} : vector<2x1x8xf32>, vector<2x8x32xf32>, vector<2x1x32xf32> -> vector<2x1x32xf32>
    "tpu.trace_stop"() : () -> ()
    %24 = vector.shape_cast %23 : vector<2x1x32xf32> to vector<2x32xf32>
    %c0_13 = arith.constant 0 : index
    %c0_14 = arith.constant 0 : index
    %25 = vector.load %arg4[%c0_13, %c0_14] : memref<2x32xf32, #tpu.memory_space<vmem>>, vector<2x32xf32>
    tpu.vector_store %arg4[%c0_13, %c0_14], %24 {strides = array<i32>} : memref<2x32xf32, #tpu.memory_space<vmem>>, vector<2x32xf32>,
    return
  }
  func.func @transform_0(%arg0: i32) -> (i32, i32) {
    %c0_i32 = arith.constant 0 : i32
    %c0_i32_0 = arith.constant 0 : i32
    %c0_i32_1 = arith.constant 0 : i32
    return %c0_i32, %c0_i32_0 : i32, i32
  }
  func.func @transform_1(%arg0: i32) -> (i32, i32, i32) {
    %c0_i32 = arith.constant 0 : i32
    %c0_i32_0 = arith.constant 0 : i32
    %c0_i32_1 = arith.constant 0 : i32
    return %arg0, %c0_i32, %c0_i32_0 : i32, i32, i32
  }
  func.func @transform_2(%arg0: i32) -> (i32, i32) {
    %c0_i32 = arith.constant 0 : i32
    %c0_i32_0 = arith.constant 0 : i32
    return %arg0, %c0_i32 : i32, i32
  }
  func.func @transform_3(%arg0: i32) -> (i32, i32) {
    %c0_i32 = arith.constant 0 : i32
    %c0_i32_0 = arith.constant 0 : i32
    return %arg0, %c0_i32 : i32, i32
  }
  func.func @transform_4(%arg0: i32) -> (i32, i32) {
    %c0_i32 = arith.constant 0 : i32
    %c0_i32_0 = arith.constant 0 : i32
    return %arg0, %c0_i32 : i32, i32
  }
}

</mosaic_0001>

<bundles_post_ra>
// kernel: tpu_custom_call.1
= control target key start
LH: loop header
LB: loop body
LE: loop exit
PB: predicated region body
PF: predicated region fallthrough
CT: control target
= control target key end

     0   :  { %10 = vsyncpa [#allocation3], 0  ;;  %s668_s0 = inlined_call_operand.hbm [shape: f32[1,32], index: 0, kind: input, shape index: {}]   ;;  %s669_s1 = inlined_call_operand.hbm [shape: f32[2,8,32], index: 1, kind: input, shape index: {}]   ;;  %s670_s2 = inlined_call_operand.vmem [shape: f32[2,8], index: 2, kind: input, shape index: {}]   ;;  %s671_s3 = inlined_call_operand.hbm [shape: f32[2,32], index: 3, kind: output, shape index: {0}]   ;;  %s672_s4 = inlined_call_operand.hbm [shape: f32[2,8], index: 4, kind: output, shape index: {1}]  }
   0x1   :  { %11 = vsyncpa [#allocation6], 0 }
   0x2   :  { %12 = vsyncpa [#allocation4], 0 }
   0x3   :  { %13 = vsyncpa [#allocation9], 0  ;;  %s567_s15 = smov [#allocation2]   ;;  %s568_s17 = smov [#allocation5]  }
   0x4   :  { %s20_s16 = sshll.u32 %s567_s15, 4  ;;  %s29_s18 = sshll.u32 %s568_s17, 4  ;;  %s21_s16 = int_to_ptr.vmem [resolvable:$true] %s20_s16  ;;  %s601_s18 = int_to_ptr.vmem [resolvable:$true] %s29_s18 }
   0x5   :  { %s471_s21 = scalar_lea.hbm %s668_s0, 16 }
   0x6   :  { %p472_p0 = scmp.ne.s32.totalorder %s668_s0, %s471_s21  ;;  %p475_p1 = scmp.lt.u32.totalorder %s471_s21, %s668_s0 }
   0x8   :  { %p477_p2 = pnand %p475_p1, %p472_p0 }
   0xa   :  { %480 = shalt.err (!%p477_p2)
}
   0xb   :  { %s481_s26 = scalar_lea.vmem %s21_s16, 16  ;;  %s485_s27 = scalar_lea.vmem %s21_s16, 32 }
   0xc   :  { %p482_p3 = scmp.ne.s32.totalorder %s21_s16, %s481_s26  ;;  %p486_p4 = scmp.lt.s32.totalorder %s21_s16, %s21_s16 }
   0xd   :  { %p487_p5 = scmp.lt.s32.totalorder %s485_s27, %s481_s26 }
   0xf   :  { %p488_p6 = por %p487_p5, %p486_p4 }
  0x11   :  { %p489_p7 = pnand %p488_p6, %p482_p3 }
  0x13   :  { %492 = shalt.err (!%p489_p7)
}
  0x14   :  { %23 = dma.hbm_to_vmem [thread:$0]  %s668_s0, 16, %s21_s16, [#allocation3]  }
  0x15   :  { %s493_s6 = scalar_lea.hbm %s669_s1, 256 }
  0x16   :  { %p494_p8 = scmp.ne.s32.totalorder %s669_s1, %s493_s6  ;;  %p497_p9 = scmp.lt.u32.totalorder %s493_s6, %s669_s1 }
  0x18   :  { %p499_p10 = pnand %p497_p9, %p494_p8 }
  0x1a   :  { %502 = shalt.err (!%p499_p10)
}
  0x1b   :  { %s503_s11 = scalar_lea.vmem %s601_s18, 256  ;;  %p508_p12 = scmp.lt.s32.totalorder %s601_s18, %s601_s18 }
  0x1c   :  { %p504_p11 = scmp.ne.s32.totalorder %s601_s18, %s503_s11  ;;  %p509_p13 = scmp.lt.s32.totalorder %s503_s11, %s503_s11 }
  0x1e   :  { %p510_p0 = por %p509_p13, %p508_p12 }
  0x20   :  { %p511_p1 = pnand %p510_p0, %p504_p11 }
  0x22   :  { %514 = shalt.err (!%p511_p1)
}
  0x23   :  { %s569_s0 = smov 128   ;;  %s570_s12 = smov 8  }
  0x24   :  { %35 = dma.hbm_to_vmem [thread:$0]  %s669_s1, 256, %s601_s18, [#allocation6], %s569_s0, %s569_s0, %s570_s12  }
  0x25   :  { %559 = dma.done.wait [#allocation3], 16  }
  0x26   :  { %560 = vsyncadd [#allocation3], 4294967280 }
  0x27   :  { %561 = dma.done.wait [#allocation6], 256  }
  0x28   :  { %562 = vsyncadd [#allocation6], 4294967040  ;;  %v571_v0 = vmov 0.0   ;;  %vm572_vm0 = vmmov 0   ;;  %vm47_vm1 = vcmask 261120   ;;  %v45_v1 = vld [vmem:[#allocation5 + $0x8] sm:$0xff]  ;;  %v223_v21 = vlaneseq }
  0x29   :  { %443 = vmatprep.subr.mxu1 %v571_v0  ;;  %438 = vmatprep.subr.mxu0 %v571_v0  ;;  %v44_v2 = vld [vmem:[#allocation5] sm:$0xff]  ;;  %v46_v3 = vld [vmem:[#allocation2] sm:$0x1]  ;;  %v197_v4 = vld [vmem:[%s670_s2] sm:$0x3]  ;;  %vm202_vm2 = vcmask 1041409  }
  0x2a   :  { %445 = vmatprep.mubr.msk.f32.mxu1 %vm572_vm0, %v571_v0  ;;  %440 = vmatprep.mubr.msk.f32.mxu0 %vm572_vm0, %v571_v0  ;;  %vm198_vm3 = vcmp.eq.f32.partialorder %v197_v4, 0.0  ;;  %vm206_vm4 = vcmask 58368   ;;  %v573_v19 = vmov 1966171168   ;;  %v224_v23 = vshrl.u32 %v223_v21, 7  ;;  %s574_s2 = smov [#allocation8]  }
  0x2b   :  { %444 = vmatpush3.xpose.msk.msra.mxu1 %vm47_vm1, %v45_v1  ;;  %439 = vmatpush3.xpose.msk.msra.mxu0 %vm47_vm1, %v44_v2  ;;  %v221_v20 = vunpack.c.l.s4 %v573_v19  ;;  %vm242_vm5 = vcmask 64512   ;;  %s410_s16 = sshll.u32 %s574_s2, 4  ;;  %s411_s16 = int_to_ptr.vmem [resolvable:$true] %s410_s16 }
  0x2c   :  { %453 = vmatprep.subr.mxu1 %v571_v0  ;;  %448 = vmatprep.subr.mxu0 %v571_v0  ;;  %s515_s17 = scalar_lea.vmem %s411_s16, 32  ;;  %p520_p3 = scmp.lt.s32.totalorder %s411_s16, %s411_s16 }
  0x2d   :  { %v222_v22 = vunpack.c.0.s8 %v221_v20  ;;  %p516_p2 = scmp.ne.s32.totalorder %s411_s16, %s515_s17  ;;  %p521_p4 = scmp.lt.s32.totalorder %s515_s17, %s515_s17 }
  0x2e   :  { %446 = vmatmul.mubr.msk.f32.vlgmr.msra.gmra.mrb[0].mxu1 %vm47_vm1, %v46_v3  ;;  %441 = vmatmul.mubr.msk.f32.vlgmr.msra.gmra.mrb[0].mxu0 %vm47_vm1, %v46_v3 }
  0x2f   :  { %454 = vmatpush3.msra.mxu1 %v45_v1  ;;  %449 = vmatpush3.msra.mxu0 %v44_v2  ;;  %v225_v24 = vsub.s32 %v222_v22, %v224_v23  ;;  %p522_p5 = por %p521_p4, %p520_p3 }
  0x30   :  { %450 = vmatprep.mubr.msk.f32.mxu0 %vm572_vm0, %v571_v0  ;;  %455 = vmatprep.mubr.msk.f32.mxu1 %vm572_vm0, %v571_v0 }
  0x31   :  { %p523_p6 = pnand %p522_p5, %p516_p2 }
 0x101   :  { %v193_v5 = vpop.f32.mrb[0].mxu1  ;;  %v120_v6 = vpop.f32.mrb[0].mxu0 }
 0x102   :  { %v201_v7 = vrot.slane %v193_v5, 7  ;;  %v447_v8 = vpop.f32.mrb[1].mxu1  ;;  %v442_v9 = vpop.f32.mrb[1].mxu0 }
 0x104   :  { %v203_v10 = vsel %vm202_vm2, %v201_v7, %v120_v6 }
 0x105   :  { %v205_v11 = vsel %vm198_vm3, -1e+09, %v203_v10 }
 0x106   :  { %v207_v12 = vsel %vm206_vm4, %v205_v11, -inf }
 0x107   :  { %208 = vmax.xlane.f32.xlu0 %v207_v12 }
 0x194   :  { %v209_v13 = vpop.xlane.xlu0 %208 }
 0x195   :  { %v210_v14 = vsub.f32 %v205_v11, %v209_v13 }
 0x197   :  { %v211_v15 = vmul.f32 1.442695, %v210_v14 }
 0x199   :  { %467 = vpow2.f32 %v211_v15 }
 0x1a3   :  { %v468_v16 = vpop.eup %467 }
 0x1a4   :  { %v213_v17 = vsel %vm206_vm4, %v468_v16, 0.0 }
 0x1a5   :  { %214 = vadd.xlane.f32.xlu0 %v213_v17 }
 0x232   :  { %v215_v18 = vpop.xlane.xlu0 %214 }
 0x233   :  { %469 = vrcp.f32 %v215_v18 }
 0x23d   :  { %v470_v25 = vpop.eup %469 }
 0x23e   :  { %v217_v26 = vmul.f32 %v470_v25, %v468_v16 }
 0x240   :  { %v226_v27 = vrot.slane %v217_v26, %v225_v24  ;;  %218 = vst.msk [vmem:[#allocation8] sm:$0x3] %vm206_vm4, %v217_v26 }
 0x242   :  { %v234_v28 = vrot.slane %v226_v27, %v225_v24  ;;  %v227_v29 = vcombine.high %v226_v27, %v226_v27 }
 0x244   :  { %451 = vmatmul.mubr.msk.f32.vlgmr.msra.gmra.mrb[2].mxu0 %vm242_vm5, %v234_v28  ;;  %v241_v30 = vrot.slane %v227_v29, %v225_v24 }
 0x246   :  { %456 = vmatmul.mubr.msk.f32.vlgmr.msra.gmra.mrb[2].mxu1 %vm242_vm5, %v241_v30 }
 0x247   :  { %526 = shalt.err (!%p523_p6)
}
 0x248   :  { %s527_s20 = scalar_lea.hbm %s672_s4, 32 }
 0x249   :  { %p528_p7 = scmp.ne.s32.totalorder %s672_s4, %s527_s20  ;;  %p531_p8 = scmp.lt.u32.totalorder %s527_s20, %s672_s4 }
 0x24b   :  { %p533_p9 = pnand %p531_p8, %p528_p7 }
 0x24d   :  { %536 = shalt.err (!%p533_p9)
}
 0x24e   :  { %413 = dma.vmem_to_hbm [thread:$0]  %s411_s16, 32, %s672_s4, [#allocation9]   ;;  %vm392_vm6 = vcmask 254976  }
 0x24f   :  { %s575_s27 = smov [#allocation7]  }
 0x250   :  { %s400_s28 = sshll.u32 %s575_s27, 4  ;;  %s401_s28 = int_to_ptr.vmem [resolvable:$true] %s400_s28 }
 0x251   :  { %s537_s29 = scalar_lea.vmem %s401_s28, 32  ;;  %p542_p11 = scmp.lt.s32.totalorder %s401_s28, %s401_s28 }
 0x252   :  { %p538_p10 = scmp.ne.s32.totalorder %s401_s28, %s537_s29  ;;  %p543_p12 = scmp.lt.s32.totalorder %s537_s29, %s537_s29 }
 0x254   :  { %p544_p13 = por %p543_p12, %p542_p11 }
 0x256   :  { %p545_p0 = pnand %p544_p13, %p538_p10 }
 0x317   :  { %v311_v31 = vpop.f32.mrb[2].mxu0 }
 0x318   :  { %v452_v32 = vpop.f32.mrb[3].mxu0 }
 0x319   :  { %v383_v33 = vpop.f32.mrb[2].mxu1 }
 0x31a   :  { %v389_v34 = vrot.slane %v383_v33, 7  ;;  %v457_v35 = vpop.f32.mrb[3].mxu1 }
 0x31c   :  { %v390_v36 = vsel %vm202_vm2, %v389_v34, %v311_v31 }
 0x31d   :  { %393 = vst.msk [vmem:[#allocation7] sm:$0x3] %vm392_vm6, %v390_v36 }
 0x31e   :  { %548 = shalt.err (!%p545_p0)
}
 0x31f   :  { %s549_s5 = scalar_lea.hbm %s671_s3, 32 }
 0x320   :  { %p550_p1 = scmp.ne.s32.totalorder %s671_s3, %s549_s5  ;;  %p553_p2 = scmp.lt.u32.totalorder %s549_s5, %s671_s3 }
 0x322   :  { %p555_p3 = pnand %p553_p2, %p550_p1 }
 0x324   :  { %558 = shalt.err (!%p555_p3)
}
 0x325   :  { %403 = dma.vmem_to_hbm [thread:$0]  %s401_s28, 32, %s671_s3, [#allocation4]  }
 0x326   :  { %563 = dma.done.wait [#allocation4], 32  }
 0x327   :  { %564 = vsyncadd [#allocation4], 4294967264 }
 0x328   :  { %565 = dma.done.wait [#allocation9], 32  }
 0x329   :  { %566 = vsyncadd [#allocation9], 4294967264 }
 0x32a   :  { %420 = vsyncpa [#allocation3], 1 }
 0x32b   :  { %421 = vsyncpa [#allocation6], 1 }
 0x32c   :  { %422 = vsyncpa [#allocation4], 1 }
 0x32d   :  { %423 = vsyncpa [#allocation9], 1 }

</bundles_post_ra>
